<compile_context>
chip_gen: v5e
topology: v5e:2x2
jax: 0.10.0
libtpu: 0.0.40
codegen_flags: <defaults>
</compile_context>

<pallas_src>
import jax
import jax.numpy as jnp
from jax.experimental import pallas as pl
from jax.experimental.pallas import tpu as pltpu  # noqa: F401  (TPU backend)


def _copy_kernel(x_ref, o_ref):
    # Plain same-shape copy; the "unsqueeze" is expressed entirely in the
    # wrapper via zero-cost reshapes.
    o_ref[...] = x_ref[...]


def unsqueeze0(x):
    G, S1, S2 = x.shape
    n = S1 * S2

    # Free metadata reshape to a lane-dense slab outside the kernel.
    x2 = x.reshape(G, n)

    # Gridless, single-invocation copy: the full array is one VMEM block
    # (block shape == full array dims, so the (8,128) divisibility rule does
    # not apply).  One DMA in, one DMA out, no grid-loop overhead.
    y2 = pl.pallas_call(
        _copy_kernel,
        out_shape=jax.ShapeDtypeStruct((G, n), x.dtype),
        in_specs=[pl.BlockSpec((G, n), lambda: (0, 0))],
        out_specs=pl.BlockSpec((G, n), lambda: (0, 0)),
    )(x2)

    # Free metadata reshape back, adding the leading singleton dim (the
    # actual "unsqueeze").
    return y2.reshape(1, G, S1, S2)


if __name__ == "__main__":
    key = jax.random.PRNGKey(0)
    # shapes implied by the module: x348 = randn([16, 49, 49])
    x = jax.random.normal(key, (16, 49, 49), dtype=jnp.float32)

    y = unsqueeze0(x)
    jax.block_until_ready(y)

    # correctness check against plain JAX reference
    y_ref = jnp.expand_dims(x, 0)
    assert y.shape == (1, 16, 49, 49), y.shape
    assert jnp.array_equal(y, y_ref)

    print("KERNEL_OK")
</pallas_src>

<mosaic_0001>
module attributes {stable_mosaic.version = 11 : i64} {
  func.func @_copy_kernel(%arg0: memref<16x2401xf32, #tpu.memory_space<vmem>>, %arg1: memref<16x2401xf32, #tpu.memory_space<vmem>>) attributes {dimension_semantics = [], scalar_prefetch = 0 : i64, scratch_operands = 0 : i64, tpu.core_type = #tpu.core_type<tc>} {
    %c0 = arith.constant 0 : index
    %c0_0 = arith.constant 0 : index
    %0 = vector.load %arg0[%c0, %c0_0] : memref<16x2401xf32, #tpu.memory_space<vmem>>, vector<16x2401xf32>
    %c0_1 = arith.constant 0 : index
    %c0_2 = arith.constant 0 : index
    %1 = vector.load %arg1[%c0_1, %c0_2] : memref<16x2401xf32, #tpu.memory_space<vmem>>, vector<16x2401xf32>
    tpu.vector_store %arg1[%c0_1, %c0_2], %0 {strides = array<i32>} : memref<16x2401xf32, #tpu.memory_space<vmem>>, vector<16x2401xf32>,
    return
  }
}

</mosaic_0001>

<bundles_post_ra>
// kernel: tpu_custom_call.1
= control target key start
LH: loop header
LB: loop body
LE: loop exit
PB: predicated region body
PF: predicated region fallthrough
CT: control target
= control target key end

     0   :  { %6 = vsyncpa [#allocation3], 0  ;;  %s205_s0 = inlined_call_operand.hbm [shape: f32[16,2401], index: 0, kind: input, shape index: {}]   ;;  %s206_s1 = inlined_call_operand.hbm [shape: f32[16,2401], index: 1, kind: output, shape index: {}]  }
   0x1   :  { %7 = vsyncpa [#allocation4], 0  ;;  %s12_s8 = sshll.u32 %s205_s0, 4  ;;  %s177_s9 = smov [#allocation2]   ;;  %s13_s8 = int_to_ptr.hbm [resolvable:$true] %s12_s8 }
   0x2   :  { %s14_s10 = sshll.u32 %s177_s9, 4  ;;  %s178_s11 = smov 2432   ;;  %s15_s10 = int_to_ptr.vmem [resolvable:$true] %s14_s10 }
   0x3   :  { %s179_s12 = smov 152  }
   0x4   :  { %20 = dma.hbm_to_vmem [thread:$0]  %s13_s8, 4864, %s15_s10, [#allocation3], %s178_s11, %s178_s11, %s179_s12  }
   0x5   :  { %173 = dma.done.wait [#allocation3], 4864  }
   0x6   :  { %174 = vsyncadd [#allocation3], 4294962432  ;;  %v25_v0 = vld [vmem:[#allocation2] sm:$0xff]  ;;  %v26_v1 = vld [vmem:[#allocation2 + $0x8] sm:$0xff]  ;;  %vm81_vm0 = vcmask 793600   ;;  %s180_s0 = smov [#allocation5]  }
   0x7   :  { %v27_v2 = vld [vmem:[#allocation2 + $0x10] sm:$0xff]  ;;  %63 = vst [vmem:[#allocation5] sm:$0xff] %v25_v0  ;;  %v28_v3 = vld [vmem:[#allocation2 + $0x18] sm:$0xff]  ;;  %v29_v4 = vld [vmem:[#allocation2 + $0x20] sm:$0xff]  ;;  %s106_s13 = sshll.u32 %s180_s0, 4  ;;  %s108_s16 = sshll.u32 %s206_s1, 4  ;;  %s107_s13 = int_to_ptr.vmem [resolvable:$true] %s106_s13  ;;  %s109_s16 = int_to_ptr.hbm [resolvable:$true] %s108_s16 }
   0x8   :  { %64 = vst [vmem:[#allocation5 + $0x8] sm:$0xff] %v26_v1  ;;  %v30_v5 = vld [vmem:[#allocation2 + $0x28] sm:$0xff]  ;;  %v31_v6 = vld [vmem:[#allocation2 + $0x30] sm:$0xff]  ;;  %v32_v7 = vld [vmem:[#allocation2 + $0x38] sm:$0xff] }
   0x9   :  { %65 = vst [vmem:[#allocation5 + $0x10] sm:$0xff] %v27_v2  ;;  %v33_v8 = vld [vmem:[#allocation2 + $0x40] sm:$0xff]  ;;  %v34_v9 = vld [vmem:[#allocation2 + $0x48] sm:$0xff]  ;;  %v35_v10 = vld [vmem:[#allocation2 + $0x50] sm:$0xff] }
   0xa   :  { %66 = vst [vmem:[#allocation5 + $0x18] sm:$0xff] %v28_v3  ;;  %v36_v11 = vld [vmem:[#allocation2 + $0x58] sm:$0xff]  ;;  %v37_v12 = vld [vmem:[#allocation2 + $0x60] sm:$0xff]  ;;  %v38_v13 = vld [vmem:[#allocation2 + $0x68] sm:$0xff] }
   0xb   :  { %67 = vst [vmem:[#allocation5 + $0x20] sm:$0xff] %v29_v4  ;;  %v39_v14 = vld [vmem:[#allocation2 + $0x70] sm:$0xff]  ;;  %v40_v15 = vld [vmem:[#allocation2 + $0x78] sm:$0xff]  ;;  %v41_v16 = vld [vmem:[#allocation2 + $0x80] sm:$0xff] }
   0xc   :  { %68 = vst [vmem:[#allocation5 + $0x28] sm:$0xff] %v30_v5  ;;  %v42_v17 = vld [vmem:[#allocation2 + $0x88] sm:$0xff]  ;;  %v43_v18 = vld [vmem:[#allocation2 + $0x90] sm:$0xff]  ;;  %v44_v19 = vld [vmem:[#allocation2 + $0x98] sm:$0xff] }
   0xd   :  { %69 = vst [vmem:[#allocation5 + $0x30] sm:$0xff] %v31_v6  ;;  %v45_v20 = vld [vmem:[#allocation2 + $0xa0] sm:$0xff]  ;;  %v46_v21 = vld [vmem:[#allocation2 + $0xa8] sm:$0xff]  ;;  %v47_v22 = vld [vmem:[#allocation2 + $0xb0] sm:$0xff] }
   0xe   :  { %70 = vst [vmem:[#allocation5 + $0x38] sm:$0xff] %v32_v7  ;;  %v48_v23 = vld [vmem:[#allocation2 + $0xb8] sm:$0xff]  ;;  %v49_v24 = vld [vmem:[#allocation2 + $0xc0] sm:$0xff]  ;;  %v50_v25 = vld [vmem:[#allocation2 + $0xc8] sm:$0xff] }
   0xf   :  { %71 = vst [vmem:[#allocation5 + $0x40] sm:$0xff] %v33_v8  ;;  %v51_v26 = vld [vmem:[#allocation2 + $0xd0] sm:$0xff]  ;;  %v52_v27 = vld [vmem:[#allocation2 + $0xd8] sm:$0xff]  ;;  %v53_v28 = vld [vmem:[#allocation2 + $0xe0] sm:$0xff] }
  0x10   :  { %72 = vst [vmem:[#allocation5 + $0x48] sm:$0xff] %v34_v9  ;;  %v54_v29 = vld [vmem:[#allocation2 + $0xe8] sm:$0xff]  ;;  %v55_v30 = vld [vmem:[#allocation2 + $0xf0] sm:$0xff]  ;;  %v56_v31 = vld [vmem:[#allocation2 + $0xf8] sm:$0xff] }
  0x11   :  { %73 = vst [vmem:[#allocation5 + $0x50] sm:$0xff] %v35_v10  ;;  %v57_v32 = vld [vmem:[#allocation2 + $0x100] sm:$0xff]  ;;  %v58_v33 = vld [vmem:[#allocation2 + $0x108] sm:$0xff]  ;;  %v59_v34 = vld [vmem:[#allocation2 + $0x110] sm:$0xff] }
  0x12   :  { %74 = vst [vmem:[#allocation5 + $0x58] sm:$0xff] %v36_v11  ;;  %v60_v35 = vld [vmem:[#allocation2 + $0x118] sm:$0xff]  ;;  %v61_v36 = vld [vmem:[#allocation2 + $0x120] sm:$0xff]  ;;  %v62_v37 = vld [vmem:[#allocation2 + $0x128] sm:$0xff] }
  0x13   :  { %75 = vst [vmem:[#allocation5 + $0x60] sm:$0xff] %v37_v12 }
  0x14   :  { %76 = vst [vmem:[#allocation5 + $0x68] sm:$0xff] %v38_v13 }
  0x15   :  { %77 = vst [vmem:[#allocation5 + $0x70] sm:$0xff] %v39_v14 }
  0x16   :  { %78 = vst [vmem:[#allocation5 + $0x78] sm:$0xff] %v40_v15 }
  0x17   :  { %79 = vst [vmem:[#allocation5 + $0x80] sm:$0xff] %v41_v16 }
  0x18   :  { %80 = vst [vmem:[#allocation5 + $0x88] sm:$0xff] %v42_v17 }
  0x19   :  { %82 = vst.msk [vmem:[#allocation5 + $0x90] sm:$0xff] %vm81_vm0, %v43_v18 }
  0x1a   :  { %83 = vst [vmem:[#allocation5 + $0x98] sm:$0xff] %v44_v19 }
  0x1b   :  { %84 = vst [vmem:[#allocation5 + $0xa0] sm:$0xff] %v45_v20 }
  0x1c   :  { %85 = vst [vmem:[#allocation5 + $0xa8] sm:$0xff] %v46_v21 }
  0x1d   :  { %86 = vst [vmem:[#allocation5 + $0xb0] sm:$0xff] %v47_v22 }
  0x1e   :  { %87 = vst [vmem:[#allocation5 + $0xb8] sm:$0xff] %v48_v23 }
  0x1f   :  { %88 = vst [vmem:[#allocation5 + $0xc0] sm:$0xff] %v49_v24 }
  0x20   :  { %89 = vst [vmem:[#allocation5 + $0xc8] sm:$0xff] %v50_v25 }
  0x21   :  { %90 = vst [vmem:[#allocation5 + $0xd0] sm:$0xff] %v51_v26 }
  0x22   :  { %91 = vst [vmem:[#allocation5 + $0xd8] sm:$0xff] %v52_v27 }
  0x23   :  { %92 = vst [vmem:[#allocation5 + $0xe0] sm:$0xff] %v53_v28 }
  0x24   :  { %93 = vst [vmem:[#allocation5 + $0xe8] sm:$0xff] %v54_v29 }
  0x25   :  { %94 = vst [vmem:[#allocation5 + $0xf0] sm:$0xff] %v55_v30 }
  0x26   :  { %95 = vst [vmem:[#allocation5 + $0xf8] sm:$0xff] %v56_v31 }
  0x27   :  { %96 = vst [vmem:[#allocation5 + $0x100] sm:$0xff] %v57_v32 }
  0x28   :  { %97 = vst [vmem:[#allocation5 + $0x108] sm:$0xff] %v58_v33 }
  0x29   :  { %98 = vst [vmem:[#allocation5 + $0x110] sm:$0xff] %v59_v34 }
  0x2a   :  { %99 = vst [vmem:[#allocation5 + $0x118] sm:$0xff] %v60_v35 }
  0x2b   :  { %100 = vst [vmem:[#allocation5 + $0x120] sm:$0xff] %v61_v36 }
  0x2c   :  { %101 = vst.msk [vmem:[#allocation5 + $0x128] sm:$0xff] %vm81_vm0, %v62_v37 }
  0x2d   :  { %114 = dma.vmem_to_hbm [thread:$0]  %s107_s13, 4864, %s109_s16, [#allocation4], %s178_s11, %s178_s11, %s179_s12  }
  0x2e   :  { %175 = dma.done.wait [#allocation4], 4864  }
  0x2f   :  { %176 = vsyncadd [#allocation4], 4294962432 }
  0x30   :  { %119 = vsyncpa [#allocation3], 1 }
  0x31   :  { %120 = vsyncpa [#allocation4], 1 }

</bundles_post_ra>
